<compile_context>
chip_gen: v5e
topology: v5e:2x2
jax: 0.10.0
libtpu: 0.0.40
codegen_flags: <defaults>
</compile_context>

<pallas_src>
import functools
import math

import jax
import jax.numpy as jnp
from jax.experimental import pallas as pl
from jax.experimental.pallas import tpu as pltpu


# ------------------------------ Pallas kernel ------------------------------

def _label_smoothing_kernel(x_ref, tgt_ref, *out_refs, padding_idx,
                            confidence, fill, const_c, emit_true_dist):
    if emit_true_dist:
        td_ref, loss_ref = out_refs
    else:
        (loss_ref,) = out_refs

    i = pl.program_id(0)

    x = x_ref[...]                                   # (TM, V) f32 log-probs
    tgt = tgt_ref[...]                               # (TM, 1) int32 targets
    tm, v = x.shape

    col = jax.lax.broadcasted_iota(jnp.int32, (tm, v), 1)
    is_tgt = col == tgt
    row_is_pad = tgt == padding_idx                  # (TM, 1) bool

    # true_dist: fill / confidence-at-target, with pad column and pad rows
    # zeroed in a single fused select.
    td = jnp.where((col == padding_idx) | row_is_pad,
                   jnp.float32(0.0),
                   jnp.where(is_tgt, jnp.float32(confidence),
                             jnp.float32(fill)))
    if emit_true_dist:
        td_ref[...] = td                             # lane-dense (TM, 128) store

    # Closed-form per-row KL (no transcendental in-kernel):
    #   sum_j td_j*(log(td_j) - x_j) = C - sum_j td_j * x_j   (valid rows)
    # where C = confidence*log(confidence) + (size-2)*fill*log(fill).
    # Padding rows contribute 0 (td is all-zero there -> dot already 0,
    # just suppress the constant).
    row_dot = jnp.sum(td * x, axis=-1, keepdims=True)            # (TM, 1)
    row_loss = jnp.where(row_is_pad, jnp.float32(0.0),
                         jnp.float32(const_c) - row_dot)         # (TM, 1)
    block_loss = jnp.sum(row_loss)

    # Accumulate the scalar across row blocks into the (1,1) output.
    @pl.when(i == 0)
    def _():
        loss_ref[...] = jnp.zeros_like(loss_ref)

    loss_ref[...] += block_loss


def label_smoothing_loss(x, target, *, size, padding_idx, smoothing,
                         block_rows=None, return_true_dist=True):
    """x: (N, size) float32 log-probs, target: (N,) int.

    Returns (loss_scalar, true_dist) matching the PyTorch module
    (true_dist is None when return_true_dist=False).
    """
    n, v = x.shape
    assert v == size, "x.size(1) must equal self.size"

    if block_rows is None:
        # Small N: single grid step (per-step overhead dominates otherwise).
        # Large N: ~0.5 MiB blocks for the (block_rows, V) f32 tiles.
        block_rows = n if n <= 1024 else 1024
    assert n % block_rows == 0, "N must be divisible by block_rows"
    assert block_rows % 8 == 0 or block_rows == n
    grid = n // block_rows

    confidence = 1.0 - smoothing
    fill = smoothing / (size - 2)
    # Guard smoothing == 0 (fill -> 0) and smoothing == 1 (confidence -> 0):
    # 0 * log(0) contributes 0 in PyTorch's KLDivLoss convention.
    conf_term = confidence * math.log(confidence) if confidence > 0.0 else 0.0
    fill_term = (size - 2) * fill * math.log(fill) if fill > 0.0 else 0.0
    const_c = conf_term + fill_term

    tgt2d = target.astype(jnp.int32).reshape(n, 1)

    out_shape = []
    out_specs = []
    if return_true_dist:
        out_shape.append(jax.ShapeDtypeStruct((n, v), jnp.float32))
        out_specs.append(pl.BlockSpec((block_rows, v), lambda i: (i, 0)))
    out_shape.append(jax.ShapeDtypeStruct((1, 1), jnp.float32))
    out_specs.append(pl.BlockSpec((1, 1), lambda i: (0, 0)))

    outs = pl.pallas_call(
        functools.partial(_label_smoothing_kernel,
                          padding_idx=padding_idx,
                          confidence=confidence,
                          fill=fill,
                          const_c=const_c,
                          emit_true_dist=return_true_dist),
        out_shape=tuple(out_shape),
        grid=(grid,),
        in_specs=[
            pl.BlockSpec((block_rows, v), lambda i: (i, 0)),
            pl.BlockSpec((block_rows, 1), lambda i: (i, 0)),
        ],
        out_specs=tuple(out_specs),
        compiler_params=pltpu.CompilerParams(
            # The (1,1) loss output accumulates across the grid axis.
            dimension_semantics=("arbitrary",)),
    )(x, tgt2d)

    if return_true_dist:
        true_dist, loss_out = outs
    else:
        (loss_out,) = outs
        true_dist = None

    loss = loss_out[0, 0]
    return loss, true_dist


# ------------------------------ pure-JAX ref --------------------------------

def _reference(x, target, *, size, padding_idx, smoothing):
    confidence = 1.0 - smoothing
    fill = smoothing / (size - 2)
    col = jnp.arange(size, dtype=jnp.int32)[None, :]
    tgt = target.astype(jnp.int32)[:, None]
    td = jnp.where(col == tgt, confidence, fill)
    td = jnp.where(col == padding_idx, 0.0, td)
    td = jnp.where(tgt == padding_idx, 0.0, td)
    safe = jnp.where(td > 0.0, td, 1.0)
    loss = jnp.sum(jnp.where(td > 0.0, td * (jnp.log(safe) - x), 0.0))
    return loss, td


# ----------------------------------- main -----------------------------------

if __name__ == "__main__":
    N, V = 64, 128                 # (batch*seq, vocab size) — V lane-dense
    padding_idx = 0
    smoothing = 0.1

    key = jax.random.PRNGKey(0)
    k_logits, k_tgt = jax.random.split(key)

    logits = jax.random.normal(k_logits, (N, V), jnp.float32)
    x = jax.nn.log_softmax(logits, axis=-1)          # KLDivLoss expects log-probs

    target = jax.random.randint(k_tgt, (N,), 1, V, jnp.int32)
    # Force a few padding rows to exercise the index_fill_ path.
    target = target.at[3].set(padding_idx).at[17].set(padding_idx)

    fwd = jax.jit(functools.partial(label_smoothing_loss, size=V,
                                    padding_idx=padding_idx,
                                    smoothing=smoothing))
    loss, true_dist = fwd(x, target)
    jax.block_until_ready((loss, true_dist))

    # Loss-only fast path (no true_dist HBM writeback).
    fwd_loss_only = jax.jit(functools.partial(label_smoothing_loss, size=V,
                                              padding_idx=padding_idx,
                                              smoothing=smoothing,
                                              return_true_dist=False))
    loss_only, _ = fwd_loss_only(x, target)
    jax.block_until_ready(loss_only)

    ref_loss, ref_td = _reference(x, target, size=V,
                                  padding_idx=padding_idx, smoothing=smoothing)

    assert loss.shape == () and loss.dtype == jnp.float32
    assert true_dist.shape == (N, V)
    assert bool(jnp.isfinite(loss))
    assert bool(jnp.allclose(true_dist, ref_td, atol=1e-6, rtol=1e-6))
    assert bool(jnp.allclose(loss, ref_loss, atol=1e-4, rtol=1e-5))
    assert bool(jnp.allclose(loss_only, ref_loss, atol=1e-4, rtol=1e-5))
    print("KERNEL_OK")
</pallas_src>

<mosaic_0001>
module attributes {stable_mosaic.version = 11 : i64} {
  func.func @_label_smoothing_kernel(%arg0: i32, %arg1: memref<64x128xf32, #tpu.memory_space<vmem>>, %arg2: memref<64x1xi32, #tpu.memory_space<vmem>>, %arg3: memref<64x128xf32, #tpu.memory_space<vmem>>, %arg4: memref<1x1xf32, #tpu.memory_space<vmem>>) attributes {dimension_semantics = [#tpu.dimension_semantics<arbitrary>], iteration_bounds = array<i64: 1>, scalar_prefetch = 0 : i64, scratch_operands = 0 : i64, tpu.core_type = #tpu.core_type<tc>, window_params = [{transform_indices = @transform_0, window_bounds = array<i64: 64, 128>}, {transform_indices = @transform_1, window_bounds = array<i64: 64, 1>}, {transform_indices = @transform_2, window_bounds = array<i64: 64, 128>}, {pipeline_mode = #tpu.pipeline_mode<synchronous>, transform_indices = @transform_3, window_bounds = array<i64: 1, 1>}]} {
    %c0 = arith.constant 0 : index
    %c0_0 = arith.constant 0 : index
    %0 = vector.load %arg1[%c0, %c0_0] : memref<64x128xf32, #tpu.memory_space<vmem>>, vector<64x128xf32>
    %c0_1 = arith.constant 0 : index
    %c0_2 = arith.constant 0 : index
    %1 = vector.load %arg2[%c0_1, %c0_2] : memref<64x1xi32, #tpu.memory_space<vmem>>, vector<64x1xi32>
    %2 = tpu.iota {dimensions = array<i32: 1>} : vector<64x128xi32>
    %3 = vector.broadcast %1 : vector<64x1xi32> to vector<64x128xi32>
    %4 = arith.cmpi eq, %2, %3 : vector<64x128xi32>
    %c0_i32 = arith.constant 0 : i32
    %5 = vector.broadcast %c0_i32 : i32 to vector<64x1xi32>
    %6 = arith.cmpi eq, %1, %5 : vector<64x1xi32>
    %c0_i32_3 = arith.constant 0 : i32
    %7 = vector.broadcast %c0_i32_3 : i32 to vector<64x128xi32>
    %8 = arith.cmpi eq, %2, %7 : vector<64x128xi32>
    %9 = vector.broadcast %6 : vector<64x1xi1> to vector<64x128xi1>
    %10 = arith.ori %8, %9 : vector<64x128xi1>
    %cst = arith.constant 0.899999976 : f32
    %cst_4 = arith.constant 7.93650805E-4 : f32
    %11 = vector.broadcast %cst : f32 to vector<64x128xf32>
    %12 = vector.broadcast %cst_4 : f32 to vector<64x128xf32>
    %13 = arith.select %4, %11, %12 : vector<64x128xi1>, vector<64x128xf32>
    %cst_5 = arith.constant 0.000000e+00 : f32
    %14 = vector.broadcast %cst_5 : f32 to vector<64x128xf32>
    %15 = arith.select %10, %14, %13 : vector<64x128xi1>, vector<64x128xf32>
    %c0_6 = arith.constant 0 : index
    %c0_7 = arith.constant 0 : index
    %16 = vector.load %arg3[%c0_6, %c0_7] : memref<64x128xf32, #tpu.memory_space<vmem>>, vector<64x128xf32>
    tpu.vector_store %arg3[%c0_6, %c0_7], %15 {strides = array<i32>} : memref<64x128xf32, #tpu.memory_space<vmem>>, vector<64x128xf32>,
    %17 = arith.mulf %15, %0 : vector<64x128xf32>
    %cst_8 = arith.constant dense<0.000000e+00> : vector<64xf32>
    %18 = vector.multi_reduction <add>, %17, %cst_8 [1] : vector<64x128xf32> to vector<64xf32>
    %19 = vector.shape_cast %18 : vector<64xf32> to vector<64x1xf32>
    %cst_9 = arith.constant -0.808711171 : f32
    %20 = vector.broadcast %cst_9 : f32 to vector<64x1xf32>
    %21 = arith.subf %20, %19 : vector<64x1xf32>
    %cst_10 = arith.constant 0.000000e+00 : f32
    %22 = vector.broadcast %cst_10 : f32 to vector<64x1xf32>
    %23 = arith.select %6, %22, %21 : vector<64x1xi1>, vector<64x1xf32>
    %24 = vector.shape_cast %23 : vector<64x1xf32> to vector<1x64x1xf32>
    %cst_11 = arith.constant dense<0.000000e+00> : vector<1xf32>
    %25 = vector.multi_reduction <add>, %24, %cst_11 [1, 2] : vector<1x64x1xf32> to vector<1xf32>
    %26 = vector.shape_cast %25 : vector<1xf32> to vector<1x1x1xf32>
    %27 = vector.extract %26[0, 0, 0] : f32 from vector<1x1x1xf32>
    %c0_i32_12 = arith.constant 0 : i32
    %28 = arith.cmpi eq, %arg0, %c0_i32_12 : i32
    %29 = arith.extui %28 : i1 to i32
    %c0_i32_13 = arith.constant 0 : i32
    %30 = arith.cmpi ne, %29, %c0_i32_13 : i32
    scf.if %30 {
      %cst_18 = arith.constant 0.000000e+00 : f32
      %35 = vector.broadcast %cst_18 : f32 to vector<1x1xf32>
      %c0_19 = arith.constant 0 : index
      %c0_20 = arith.constant 0 : index
      %36 = vector.load %arg4[%c0_19, %c0_20] : memref<1x1xf32, #tpu.memory_space<vmem>>, vector<1x1xf32>
      tpu.vector_store %arg4[%c0_19, %c0_20], %35 {strides = array<i32>} : memref<1x1xf32, #tpu.memory_space<vmem>>, vector<1x1xf32>,
    } else {
    }
    %c0_14 = arith.constant 0 : index
    %c0_15 = arith.constant 0 : index
    %31 = vector.load %arg4[%c0_14, %c0_15] : memref<1x1xf32, #tpu.memory_space<vmem>>, vector<1x1xf32>
    %32 = vector.broadcast %27 : f32 to vector<1x1xf32>
    %33 = arith.addf %31, %32 : vector<1x1xf32>
    %c0_16 = arith.constant 0 : index
    %c0_17 = arith.constant 0 : index
    %34 = vector.load %arg4[%c0_16, %c0_17] : memref<1x1xf32, #tpu.memory_space<vmem>>, vector<1x1xf32>
    tpu.vector_store %arg4[%c0_16, %c0_17], %33 {strides = array<i32>} : memref<1x1xf32, #tpu.memory_space<vmem>>, vector<1x1xf32>,
    return
  }
  func.func @transform_0(%arg0: i32) -> (i32, i32) {
    %c0_i32 = arith.constant 0 : i32
    %c0_i32_0 = arith.constant 0 : i32
    return %arg0, %c0_i32 : i32, i32
  }
  func.func @transform_1(%arg0: i32) -> (i32, i32) {
    %c0_i32 = arith.constant 0 : i32
    %c0_i32_0 = arith.constant 0 : i32
    return %arg0, %c0_i32 : i32, i32
  }
  func.func @transform_2(%arg0: i32) -> (i32, i32) {
    %c0_i32 = arith.constant 0 : i32
    %c0_i32_0 = arith.constant 0 : i32
    return %arg0, %c0_i32 : i32, i32
  }
  func.func @transform_3(%arg0: i32) -> (i32, i32) {
    %c0_i32 = arith.constant 0 : i32
    %c0_i32_0 = arith.constant 0 : i32
    %c0_i32_1 = arith.constant 0 : i32
    return %c0_i32, %c0_i32_0 : i32, i32
  }
}

</mosaic_0001>

<bundles_post_ra>
// kernel: label_smoothing_loss.1
= control target key start
LH: loop header
LB: loop body
LE: loop exit
PB: predicated region body
PF: predicated region fallthrough
CT: control target
= control target key end

     0   :  { %9 = vsyncpa [#allocation3], 0  ;;  %v320_v2 = vmov 0   ;;  %s508_s0 = inlined_call_operand.vmem [shape: f32[64,128], index: 0, kind: input, shape index: {}]   ;;  %s509_s1 = inlined_call_operand.vmem [shape: s32[64,1], index: 1, kind: input, shape index: {}]   ;;  %s510_s2 = inlined_call_operand.hbm [shape: f32[64,128], index: 2, kind: output, shape index: {0}]   ;;  %s511_s3 = inlined_call_operand.hbm [shape: f32[1,1], index: 3, kind: output, shape index: {1}]  }
   0x1   :  { %v350_v0 = vld [vmem:[%s509_s1 + $0x10] sm:$0xff]  ;;  %v355_v1 = vld [vmem:[%s509_s1] sm:$0xff]  ;;  %267 = vset.pattern.permute.xlu2 %v320_v2  ;;  %265 = vset.pattern.permute.xlu0 %v320_v2  ;;  %v364_v4 = vld [vmem:[%s509_s1 + $0x8] sm:$0xff] }
   0x2   :  { %vm65_vm0 = vcmp.eq.s32.totalorder %v355_v1, 0  ;;  %266 = vset.pattern.permute.xlu1 %v320_v2  ;;  %40 = vperm.xlu2 %267, %v350_v0  }
   0x3   :  { %v74_v3 = vsel %vm65_vm0, 1, %v320_v2  ;;  %34 = vperm.xlu0 %265, %v355_v1  }
   0x4   :  { %83 = vperm.xlu1 %266, %v74_v3  }
   0x5   :  { %10 = vsyncpa [#allocation5], 0  ;;  %vm67_vm1 = vcmp.eq.s32.totalorder %v350_v0, 0  ;;  %vm66_vm2 = vcmp.eq.s32.totalorder %v364_v4, 0  ;;  %v376_v7 = vld [vmem:[%s509_s1 + $0x18] sm:$0xff]  ;;  %v383_v8 = vld [vmem:[%s509_s1 + $0x20] sm:$0xff]  ;;  %v31_v17 = vlaneseq }
   0x6   :  { %v76_v5 = vsel %vm67_vm1, 1, %v320_v2  ;;  %v75_v6 = vsel %vm66_vm2, 1, %v320_v2  ;;  %vm68_vm3 = vcmp.eq.s32.totalorder %v376_v7, 0  ;;  %v390_v10 = vld [vmem:[%s509_s1 + $0x28] sm:$0xff]  ;;  %vm69_vm5 = vcmp.eq.s32.totalorder %v383_v8, 0  ;;  %v403_v13 = vld [vmem:[%s509_s1 + $0x30] sm:$0xff] }
   0x7   :  { %v77_v9 = vsel %vm68_vm3, 1, %v320_v2  ;;  %vm70_vm4 = vcmp.eq.s32.totalorder %v390_v10, 0  ;;  %v78_v12 = vsel %vm69_vm5, 1, %v320_v2  ;;  %vm71_vm6 = vcmp.eq.s32.totalorder %v403_v13, 0  ;;  %v410_v14 = vld [vmem:[%s509_s1 + $0x38] sm:$0xff]  ;;  %v17_v23 = vld [vmem:[%s508_s0 + $0x10] sm:$0xff] }
   0x8   :  { %v79_v11 = vsel %vm70_vm4, 1, %v320_v2  ;;  %v80_v15 = vsel %vm71_vm6, 1, %v320_v2  ;;  %vm512_vm7 = vcmp.eq.s32.totalorder %v410_v14, 0  ;;  %v419_v19 = vand.u32 127, %v31_v17  ;;  %v15_v28 = vld [vmem:[%s508_s0] sm:$0xff]  ;;  %v16_v34 = vld [vmem:[%s508_s0 + $0x8] sm:$0xff] }
   0x9   :  { %v81_v16 = vsel %vm512_vm7, 1, %v320_v2  ;;  %v321_v20 = vmov 0.0007936508   ;;  %v18_v41 = vld [vmem:[%s508_s0 + $0x18] sm:$0xff]  ;;  %v19_v48 = vld [vmem:[%s508_s0 + $0x20] sm:$0xff]  ;;  %v20_v49 = vld [vmem:[%s508_s0 + $0x28] sm:$0xff] }
   0xa   :  { %89 = vperm.xlu2 %267, %v76_v5   ;;  %vm73_vm9 = vcmp.eq.s32.totalorder %v419_v19, 0  ;;  %v21_v58 = vld [vmem:[%s508_s0 + $0x30] sm:$0xff]  ;;  %v22_v2 = vld [vmem:[%s508_s0 + $0x38] sm:$0xff]  ;;  %s322_s0 = smov [#allocation2]   ;;  %s228_s19 = sshll.u32 %s510_s2, 4  ;;  %s229_s19 = int_to_ptr.hbm [resolvable:$true] %s228_s19 }
   0xb   :  { %37 = vperm.xlu0 %265, %v364_v4   ;;  %s226_s16 = sshll.u32 %s322_s0, 4  ;;  %s323_s20 = smov 128   ;;  %s227_s16 = int_to_ptr.vmem [resolvable:$true] %s226_s16 }
   0xc   :  { %86 = vperm.xlu1 %266, %v75_v6   ;;  %s324_s21 = smov 8   ;;  %s326_s22 = smov [#allocation4]  }
   0xd   :  { %s240_s23 = sshll.u32 %s326_s22, 4  ;;  %s242_s25 = sshll.u32 %s511_s3, 4  ;;  %s241_s23 = int_to_ptr.vmem [resolvable:$true] %s240_s23  ;;  %s243_s25 = int_to_ptr.hbm [resolvable:$true] %s242_s25 }
  0x12   :  { %46 = vperm.xlu2 %267, %v383_v8  }
  0x13   :  { %43 = vperm.xlu0 %265, %v376_v7  }
  0x14   :  { %92 = vperm.xlu1 %266, %v77_v9  }
  0x1a   :  { %98 = vperm.xlu2 %267, %v79_v11  }
  0x1b   :  { %95 = vperm.xlu0 %265, %v78_v12  }
  0x1c   :  { %49 = vperm.xlu1 %266, %v390_v10  }
  0x22   :  { %55 = vperm.xlu2 %267, %v410_v14  }
  0x23   :  { %52 = vperm.xlu0 %265, %v403_v13  }
  0x24   :  { %101 = vperm.xlu1 %266, %v80_v15  }
  0x2b   :  { %104 = vperm.xlu0 %265, %v81_v16  }
  0x5c   :  { %v41_v18 = vpop.permute.xlu2 %40 }
  0x5d   :  { %vm59_vm8 = vcmp.eq.s32.totalorder %v419_v19, %v41_v18 }
  0x5e   :  { %v124_v21 = vsel %vm59_vm8, 0.9, %v321_v20 }
  0x64   :  { %v90_v22 = vpop.permute.xlu2 %89 }
  0x65   :  { %vm108_vm10 = vcmp.eq.s32.totalorder %v90_v22, 1 }
  0x66   :  { %vm116_vm11 = vmor %vm73_vm9, %vm108_vm10 }
  0x67   :  { %v132_v24 = vsel %vm116_vm11, 0.0, %v124_v21 }
  0x68   :  { %140 = vst [vmem:[#allocation2 + $0x10] sm:$0xff] %v132_v24  ;;  %v148_v25 = vmul.f32 %v132_v24, %v17_v23 }
  0x6a   :  { %158 = vadd.xlane.f32.xlu0 %v148_v25 }
  0x6c   :  { %v47_v36 = vpop.permute.xlu2 %46 }
  0x74   :  { %v99_v45 = vpop.permute.xlu2 %98 }
  0x75   :  { %v35_v26 = vpop.permute.xlu0 %34 }
  0x76   :  { %v84_v27 = vpop.permute.xlu1 %83  ;;  %vm57_vm12 = vcmp.eq.s32.totalorder %v419_v19, %v35_v26 }
  0x77   :  { %vm106_vm13 = vcmp.eq.s32.totalorder %v84_v27, 1  ;;  %v122_v29 = vsel %vm57_vm12, 0.9, %v321_v20 }
  0x78   :  { %vm114_vm14 = vmor %vm73_vm9, %vm106_vm13 }
  0x79   :  { %v130_v30 = vsel %vm114_vm14, 0.0, %v122_v29  ;;  %vm111_vm14 = vcmp.eq.s32.totalorder %v99_v45, 1 }
  0x7a   :  { %138 = vst [vmem:[#allocation2] sm:$0xff] %v130_v30  ;;  %v146_v31 = vmul.f32 %v130_v30, %v15_v28 }
  0x7c   :  { %154 = vadd.xlane.f32.xlu1 %v146_v31  ;;  %v56_v61 = vpop.permute.xlu2 %55 }
  0x7d   :  { %v38_v32 = vpop.permute.xlu0 %37 }
  0x7e   :  { %v87_v33 = vpop.permute.xlu1 %86  ;;  %vm58_vm15 = vcmp.eq.s32.totalorder %v419_v19, %v38_v32 }
  0x7f   :  { %vm107_vm8 = vcmp.eq.s32.totalorder %v87_v33, 1  ;;  %v123_v35 = vsel %vm58_vm15, 0.9, %v321_v20  ;;  %vm61_vm15 = vcmp.eq.s32.totalorder %v419_v19, %v47_v36 }
  0x80   :  { %vm115_vm10 = vmor %vm73_vm9, %vm107_vm8  ;;  %v126_v50 = vsel %vm61_vm15, 0.9, %v321_v20 }
  0x81   :  { %v131_v37 = vsel %vm115_vm10, 0.0, %v123_v35  ;;  %vm119_vm8 = vmor %vm73_vm9, %vm111_vm14  ;;  %vm64_vm14 = vcmp.eq.s32.totalorder %v419_v19, %v56_v61 }
  0x82   :  { %139 = vst [vmem:[#allocation2 + $0x8] sm:$0xff] %v131_v37  ;;  %v147_v38 = vmul.f32 %v131_v37, %v16_v34  ;;  %v129_v3 = vsel %vm64_vm14, 0.9, %v321_v20 }
  0x84   :  { %156 = vadd.xlane.f32.xlu2 %v147_v38 }
  0x85   :  { %v44_v39 = vpop.permute.xlu0 %43 }
  0x86   :  { %v93_v40 = vpop.permute.xlu1 %92  ;;  %vm60_vm11 = vcmp.eq.s32.totalorder %v419_v19, %v44_v39 }
  0x87   :  { %vm109_vm12 = vcmp.eq.s32.totalorder %v93_v40, 1  ;;  %v125_v42 = vsel %vm60_vm11, 0.9, %v321_v20 }
  0x88   :  { %vm117_vm13 = vmor %vm73_vm9, %vm109_vm12 }
  0x89   :  { %v133_v43 = vsel %vm117_vm13, 0.0, %v125_v42 }
  0x8a   :  { %141 = vst [vmem:[#allocation2 + $0x18] sm:$0xff] %v133_v43  ;;  %v149_v44 = vmul.f32 %v133_v43, %v18_v41 }
  0x8c   :  { %160 = vadd.xlane.f32.xlu2 %v149_v44 }
  0x8d   :  { %v96_v46 = vpop.permute.xlu0 %95 }
  0x8e   :  { %v50_v47 = vpop.permute.xlu1 %49  ;;  %vm110_vm10 = vcmp.eq.s32.totalorder %v96_v46, 1 }
  0x8f   :  { %vm62_vm7 = vcmp.eq.s32.totalorder %v419_v19, %v50_v47  ;;  %vm118_vm11 = vmor %vm73_vm9, %vm110_vm10  ;;  %vm186_vm10 = vcmask 7168  }
  0x90   :  { %v127_v51 = vsel %vm62_vm7, 0.9, %v321_v20  ;;  %v134_v52 = vsel %vm118_vm11, 0.0, %v126_v50  ;;  %v325_v50 = vmov 0.0  }
  0x91   :  { %v135_v53 = vsel %vm119_vm8, 0.0, %v127_v51  ;;  %142 = vst [vmem:[#allocation2 + $0x20] sm:$0xff] %v134_v52  ;;  %v150_v54 = vmul.f32 %v134_v52, %v19_v48 }
  0x92   :  { %v151_v55 = vmul.f32 %v135_v53, %v20_v49  ;;  %143 = vst [vmem:[#allocation2 + $0x28] sm:$0xff] %v135_v53 }
  0x93   :  { %162 = vadd.xlane.f32.xlu1 %v150_v54 }
  0x94   :  { %164 = vadd.xlane.f32.xlu2 %v151_v55 }
  0x95   :  { %v53_v56 = vpop.permute.xlu0 %52 }
  0x96   :  { %v102_v57 = vpop.permute.xlu1 %101  ;;  %vm63_vm12 = vcmp.eq.s32.totalorder %v419_v19, %v53_v56 }
  0x97   :  { %vm112_vm13 = vcmp.eq.s32.totalorder %v102_v57, 1  ;;  %v128_v59 = vsel %vm63_vm12, 0.9, %v321_v20 }
  0x98   :  { %vm120_vm7 = vmor %vm73_vm9, %vm112_vm13 }
  0x99   :  { %v136_v60 = vsel %vm120_vm7, 0.0, %v128_v59 }
  0x9a   :  { %144 = vst [vmem:[#allocation2 + $0x30] sm:$0xff] %v136_v60  ;;  %v152_v62 = vmul.f32 %v136_v60, %v21_v58 }
  0x9c   :  { %166 = vadd.xlane.f32.xlu0 %v152_v62 }
  0x9d   :  { %v105_v63 = vpop.permute.xlu0 %104 }
  0x9e   :  { %vm113_vm15 = vcmp.eq.s32.totalorder %v105_v63, 1 }
  0x9f   :  { %vm121_vm8 = vmor %vm73_vm9, %vm113_vm15 }
  0xa0   :  { %v137_v5 = vsel %vm121_vm8, 0.0, %v129_v3 }
  0xa1   :  { %145 = vst [vmem:[#allocation2 + $0x38] sm:$0xff] %v137_v5  ;;  %v153_v6 = vmul.f32 %v137_v5, %v22_v2 }
  0xa2   :  { %234 = dma.vmem_to_hbm [thread:$0]  %s227_s16, 1024, %s229_s19, [#allocation3], %s323_s20, %s323_s20, %s324_s21  }
  0xa3   :  { %168 = vadd.xlane.f32.xlu1 %v153_v6 }
  0xdd   :  { %v159_v17 = vpop.xlane.xlu0 %158 }
  0xde   :  { %v172_v19 = vsub.f32 -0.8087112, %v159_v17 }
  0xe0   :  { %v180_v27 = vsel %vm67_vm1, 0.0, %v172_v19  ;;  %vm215_vm1 = vcmask 0  }
  0xe1   :  { %v190_v30 = vsel %vm186_vm10, %v180_v27, 0.0  ;;  %216 = vst.msk [vmem:[#allocation4] sm:$0x1] %vm215_vm1, %v325_v50 }
  0xe8   :  { %v217_v51 = vld [vmem:[#allocation4] sm:$0x1] }
  0xef   :  { %v155_v11 = vpop.xlane.xlu1 %154 }
  0xf0   :  { %v170_v16 = vsub.f32 -0.8087112, %v155_v11 }
  0xf2   :  { %v178_v20 = vsel %vm65_vm0, 0.0, %v170_v16  ;;  %vm513_vm0 = vcmp.eq.s32.totalorder %v410_v14, 0 }
  0xf3   :  { %v187_v25 = vsel %vm186_vm10, %v178_v20, 0.0 }
  0xf7   :  { %v157_v9 = vpop.xlane.xlu2 %156 }
  0xf8   :  { %v171_v15 = vsub.f32 -0.8087112, %v157_v9 }
  0xfa   :  { %v179_v18 = vsel %vm66_vm2, 0.0, %v171_v15 }
  0xfb   :  { %v188_v23 = vsel %vm186_vm10, %v179_v18, 0.0 }
  0xfc   :  { %v189_v28 = vadd.f32 %v188_v23, %v187_v25 }
  0xfe   :  { %v191_v33 = vadd.f32 %v190_v30, %v189_v28 }
  0xff   :  { %v161_v12 = vpop.xlane.xlu2 %160 }
 0x100   :  { %v173_v22 = vsub.f32 -0.8087112, %v161_v12 }
 0x102   :  { %v181_v4 = vsel %vm68_vm3, 0.0, %v173_v22 }
 0x103   :  { %v192_v31 = vsel %vm186_vm10, %v181_v4, 0.0 }
 0x104   :  { %v193_v36 = vadd.f32 %v192_v31, %v191_v33 }
 0x106   :  { %v163_v21 = vpop.xlane.xlu1 %162 }
 0x107   :  { %v174_v24 = vsub.f32 -0.8087112, %v163_v21  ;;  %v165_v26 = vpop.xlane.xlu2 %164 }
 0x108   :  { %v175_v1 = vsub.f32 -0.8087112, %v165_v26 }
 0x109   :  { %v182_v29 = vsel %vm69_vm5, 0.0, %v174_v24 }
 0x10a   :  { %v194_v35 = vsel %vm186_vm10, %v182_v29, 0.0  ;;  %v183_v0 = vsel %vm70_vm4, 0.0, %v175_v1 }
 0x10b   :  { %v195_v37 = vadd.f32 %v194_v35, %v193_v36  ;;  %v196_v8 = vsel %vm186_vm10, %v183_v0, 0.0 }
 0x10d   :  { %v197_v40 = vadd.f32 %v196_v8, %v195_v37 }
 0x10f   :  { %v167_v32 = vpop.xlane.xlu0 %166 }
 0x110   :  { %v176_v34 = vsub.f32 -0.8087112, %v167_v32 }
 0x112   :  { %v184_v7 = vsel %vm71_vm6, 0.0, %v176_v34 }
 0x113   :  { %v198_v38 = vsel %vm186_vm10, %v184_v7, 0.0 }
 0x114   :  { %v199_v43 = vadd.f32 %v198_v38, %v197_v40 }
 0x116   :  { %v169_v39 = vpop.xlane.xlu1 %168 }
 0x117   :  { %v177_v41 = vsub.f32 -0.8087112, %v169_v39 }
 0x119   :  { %v185_v42 = vsel %vm513_vm0, 0.0, %v177_v41 }
 0x11a   :  { %v200_v44 = vsel %vm186_vm10, %v185_v42, 0.0 }
 0x11b   :  { %v201_v45 = vadd.f32 %v200_v44, %v199_v43 }
 0x11d   :  { %202 = vadd.xlane.f32.xlu2 %v201_v45 }
 0x190   :  { %v203_v10 = vpop.xlane.xlu2 %202 }
 0x191   :  { %v204_v13 = vrot.slane %v203_v10, 4 }
 0x193   :  { %v205_v14 = vadd.f32 %v204_v13, %v203_v10 }
 0x195   :  { %v206_v46 = vrot.slane %v205_v14, 2 }
 0x197   :  { %v207_v47 = vadd.f32 %v206_v46, %v205_v14 }
 0x199   :  { %v208_v48 = vrot.slane %v207_v47, 1 }
 0x19b   :  { %v209_v49 = vadd.f32 %v208_v48, %v207_v47 }
 0x19d   :  { %256 = vpush %v209_v49 }
 0x1ce   :  { %s257_s26 = spop %256 }
 0x1cf   :  { %v218_v52 = vstv %s257_s26 }
 0x1d0   :  { %v219_v53 = vadd.f32 %v218_v52, %v217_v51 }
 0x1d2   :  { %221 = vst.msk [vmem:[#allocation4] sm:$0x1] %vm215_vm1, %v219_v53 }
 0x1d3   :  { %245 = dma.vmem_to_hbm [thread:$0]  %s241_s23, 16, %s243_s25, [#allocation5]  }
 0x1d4   :  { %316 = dma.done.wait [#allocation3], 1024  }
 0x1d5   :  { %317 = vsyncadd [#allocation3], 4294966272 }
 0x1d6   :  { %318 = dma.done.wait [#allocation5], 16  }
 0x1d7   :  { %319 = vsyncadd [#allocation5], 4294967280 }
 0x1d8   :  { %254 = vsyncpa [#allocation3], 1 }
 0x1d9   :  { %255 = vsyncpa [#allocation5], 1 }

</bundles_post_ra>
